<compile_context>
chip_gen: v7x
topology: tpu7x:2x2x1
jax: 0.10.0
libtpu: 0.0.40
codegen_flags: <defaults>
</compile_context>

<pallas_src>
import functools
import math

import jax
import jax.numpy as jnp
import numpy as np
from jax import lax
from jax.experimental import pallas as pl
from jax.experimental.pallas import tpu as pltpu


def _round_up(x, m):
    return (x + m - 1) // m * m


def _cdiv(a, b):
    return (a + b - 1) // b


# PyTorch F.pad mode names -> numpy/jnp.pad mode names.
_PAD_MODE = {
    "zeros": "constant",
    "constant": "constant",
    "reflection": "reflect",
    "reflect": "reflect",
    "replicate": "edge",
    "circular": "wrap",
}


# ------------------------------ SkeletonConv ------------------------------- #
def _skeleton_conv_kernel(xcol_ref, w_ref, b_ref, o_ref):
    """One grid step: ONE MXU matmul (C_out_p, K*C_in) @ (K*C_in, N_tile)."""
    acc = lax.dot_general(
        w_ref[...], xcol_ref[...],
        dimension_numbers=(((1,), (0,)), ((), ())),
        preferred_element_type=jnp.float32)          # f32 accumulation
    o_ref[...] = (acc + b_ref[...]).astype(o_ref.dtype)   # f32 epilogue


def skeleton_conv(x, weight, mask, bias, *, stride=1, padding=0,
                  padding_mode="constant", operand_dtype=jnp.bfloat16):
    """Pallas implementation of SkeletonConv.forward.

    x: (B, C_in, T); weight/mask: (C_out, C_in, K); bias: (C_out,).
    Returns (B, C_out, L_out) with L_out = (T + 2*padding - K)//stride + 1.
    """
    B, C_in, T = x.shape
    C_out, _, K = weight.shape
    out_dtype = x.dtype

    # mask applied once, outside the kernel; weight stored in its final 2-D
    # MXU-feed layout: W2[o, k*C_in + c] = (weight * mask)[o, c, k].
    wm = weight * mask
    w2 = jnp.transpose(wm, (0, 2, 1)).reshape(C_out, K * C_in)

    if padding > 0:
        x = jnp.pad(x, ((0, 0), (0, 0), (padding, padding)),
                    mode=_PAD_MODE.get(padding_mode, padding_mode))
    T_pad = T + 2 * padding
    L_out = (T_pad - K) // stride + 1

    # im2col in the wrapper (fused XLA slices/stack): strided / unaligned
    # windows never reach the kernel, and the K taps land on the contraction
    # axis.  xcol[k*C_in + c, b*L_out + l] = x_pad[b, c, l*stride + k].
    # TODO(synk): for very long T, build xcol tile-by-tile inside the kernel
    # with a K-1 halo instead of materializing the K-times-larger im2col in HBM.
    cols = [lax.slice(x, (0, 0, k),
                      (B, C_in, k + stride * (L_out - 1) + 1),
                      (1, 1, stride)) for k in range(K)]
    xcol = jnp.stack(cols, axis=1).reshape(B, K * C_in, L_out)
    xcol = jnp.transpose(xcol, (1, 0, 2)).reshape(K * C_in, B * L_out)

    # Alignment: contraction / output rows to 8 sublanes, lane axis to 128.
    KC = K * C_in
    KC_p = _round_up(KC, 8)
    C_out_p = _round_up(C_out, 8)
    N = B * L_out
    if N >= 1024:
        n_tile = 512                                   # full MXU passes
    elif N >= 256:
        n_tile = _round_up(_cdiv(N, 2), 128)           # >=2 parallel steps (v7x)
    else:
        n_tile = _round_up(max(N, 1), 128)
    Np = _round_up(N, n_tile)

    xcol = jnp.pad(xcol, ((0, KC_p - KC), (0, Np - N)))
    w2 = jnp.pad(w2, ((0, C_out_p - C_out), (0, KC_p - KC)))
    b2 = jnp.pad(bias, (0, C_out_p - C_out)).astype(jnp.float32).reshape(C_out_p, 1)

    # bf16 MXU operands (v6e/v7x single pass, half the DMA bytes); the f32
    # accumulator + f32 bias epilogue keep numerics tight.  Pass
    # operand_dtype=jnp.float32 for a strict-f32 path.
    xcol = xcol.astype(operand_dtype)
    w2 = w2.astype(operand_dtype)

    out = pl.pallas_call(
        _skeleton_conv_kernel,
        out_shape=jax.ShapeDtypeStruct((C_out_p, Np), out_dtype),
        grid=(Np // n_tile,),
        in_specs=[
            pl.BlockSpec((KC_p, n_tile), lambda i: (0, i),
                         memory_space=pltpu.MemorySpace.VMEM),
            pl.BlockSpec((C_out_p, KC_p), lambda i: (0, 0),
                         memory_space=pltpu.MemorySpace.VMEM),
            pl.BlockSpec((C_out_p, 1), lambda i: (0, 0),
                         memory_space=pltpu.MemorySpace.VMEM),
        ],
        out_specs=pl.BlockSpec((C_out_p, n_tile), lambda i: (0, i),
                               memory_space=pltpu.MemorySpace.VMEM),
        compiler_params=pltpu.CompilerParams(
            dimension_semantics=("parallel",)),
    )(xcol, w2, b2)

    out = out[:C_out, :N].reshape(C_out, B, L_out)
    return jnp.transpose(out, (1, 0, 2))


# ----------------------------- SkeletonLinear ------------------------------ #
def _skeleton_linear_kernel(x_ref, w_ref, b_ref, o_ref):
    # Contract the last dim of both operands -> no transpose of the weight.
    acc = lax.dot_general(
        x_ref[...], w_ref[...],
        dimension_numbers=(((1,), (1,)), ((), ())),
        preferred_element_type=jnp.float32)
    o_ref[...] = (acc + b_ref[...]).astype(o_ref.dtype)


def skeleton_linear(x, weight, mask, bias, extra_dim1=False,
                    operand_dtype=jnp.bfloat16):
    """Pallas implementation of SkeletonLinear.forward (offset_enc path)."""
    B = x.shape[0]
    out_dtype = x.dtype
    x2 = x.reshape(B, -1)                              # flatten like PyTorch
    C_out, C_in = weight.shape

    wm = (weight * mask).astype(operand_dtype)         # mask applied OUTSIDE kernel
    b2 = bias.astype(jnp.float32).reshape(1, C_out)

    TB = min(512, _round_up(B, 8))                     # sublane-aligned batch tile
    Bp = _round_up(B, TB)
    if Bp != B:
        x2 = jnp.pad(x2, ((0, Bp - B), (0, 0)))
    x2 = x2.astype(operand_dtype)

    out = pl.pallas_call(
        _skeleton_linear_kernel,
        out_shape=jax.ShapeDtypeStruct((Bp, C_out), out_dtype),
        grid=(Bp // TB,),
        in_specs=[
            pl.BlockSpec((TB, C_in), lambda i: (i, 0),
                         memory_space=pltpu.MemorySpace.VMEM),
            pl.BlockSpec((C_out, C_in), lambda i: (0, 0),
                         memory_space=pltpu.MemorySpace.VMEM),
            pl.BlockSpec((1, C_out), lambda i: (0, 0),
                         memory_space=pltpu.MemorySpace.VMEM),
        ],
        out_specs=pl.BlockSpec((TB, C_out), lambda i: (i, 0),
                               memory_space=pltpu.MemorySpace.VMEM),
        compiler_params=pltpu.CompilerParams(
            dimension_semantics=("parallel",)),
    )(x2, wm, b2)

    out = out[:B]
    if extra_dim1:
        out = out.reshape(out.shape + (1,))
    return out


# --------------------- deterministic parameter setup ----------------------- #
def _expand_neighbour_list(neighbour_list, per):
    expanded_all = []
    for neighbour in neighbour_list:
        expanded = []
        for k in neighbour:
            for i in range(per):
                expanded.append(k * per + i)
        expanded_all.append(expanded)
    return expanded_all


def make_skeleton_conv_params(neighbour_list, in_channels, out_channels,
                              kernel_size, joint_num, key):
    """Same init math as SkeletonConv.__init__/reset_parameters, JAX RNG."""
    in_per = in_channels // joint_num
    out_per = out_channels // joint_num
    expanded_list = _expand_neighbour_list(neighbour_list, in_per)

    weight = np.zeros((out_channels, in_channels, kernel_size), np.float32)
    mask = np.zeros_like(weight)
    bias = np.zeros((out_channels,), np.float32)

    keys = jax.random.split(key, 2 * len(neighbour_list))
    for i, cols in enumerate(expanded_list):
        rows = np.arange(i * out_per, (i + 1) * out_per)
        cols = np.asarray(cols, np.int64)
        mask[np.ix_(rows, cols)] = 1.0
        fan_in = len(cols) * kernel_size
        bound = 1.0 / math.sqrt(fan_in)                # kaiming_uniform_(a=sqrt(5))
        blk = jax.random.uniform(keys[2 * i], (out_per, len(cols), kernel_size),
                                 minval=-bound, maxval=bound, dtype=jnp.float32)
        weight[np.ix_(rows, cols)] = np.asarray(blk)
        bias[rows] = np.asarray(jax.random.uniform(
            keys[2 * i + 1], (out_per,), minval=-bound, maxval=bound,
            dtype=jnp.float32))
    return jnp.asarray(weight), jnp.asarray(mask), jnp.asarray(bias)


def make_skeleton_linear_params(neighbour_list, in_channels, out_channels, key):
    """Same init math as SkeletonLinear.reset_parameters, JAX RNG."""
    joint_num = len(neighbour_list)
    in_per = in_channels // joint_num
    out_per = out_channels // joint_num
    expanded_list = _expand_neighbour_list(neighbour_list, in_per)

    weight = np.zeros((out_channels, in_channels), np.float32)
    mask = np.zeros_like(weight)
    keys = jax.random.split(key, joint_num + 1)
    for i, cols in enumerate(expanded_list):
        rows = np.arange(i * out_per, (i + 1) * out_per)
        cols = np.asarray(cols, np.int64)
        mask[np.ix_(rows, cols)] = 1.0
        bound = 1.0 / math.sqrt(len(cols))             # kaiming_uniform_(a=sqrt(5))
        blk = jax.random.uniform(keys[i], (out_per, len(cols)),
                                 minval=-bound, maxval=bound, dtype=jnp.float32)
        weight[np.ix_(rows, cols)] = np.asarray(blk)
    b_bound = 1.0 / math.sqrt(in_channels)
    bias = jax.random.uniform(keys[-1], (out_channels,),
                              minval=-b_bound, maxval=b_bound, dtype=jnp.float32)
    return jnp.asarray(weight), jnp.asarray(mask), bias


# ----------------------------------- main ----------------------------------- #
if __name__ == "__main__":
    neighbour_list = [[0, 1], [0, 1, 2], [1, 2, 3], [2, 3]]
    joint_num = len(neighbour_list)
    in_per, out_per = 4, 8
    C_in = in_per * joint_num        # 16
    C_out = out_per * joint_num      # 32
    K, stride, padding = 3, 1, 1
    B, T = 2, 128                    # N = B*L_out = 256 -> 2 lane-dense steps

    key = jax.random.PRNGKey(0)
    k_conv, k_lin, k_x, k_xo = jax.random.split(key, 4)

    # --------------- SkeletonConv (the module's forward pass) --------------
    weight, mask, bias = make_skeleton_conv_params(
        neighbour_list, C_in, C_out, K, joint_num, k_conv)
    x = jax.random.normal(k_x, (B, C_in, T), dtype=jnp.float32)

    out = skeleton_conv(x, weight, mask, bias,
                        stride=stride, padding=padding,
                        padding_mode="constant")
    out = jax.block_until_ready(out)

    # float64 host reference: conv1d with masked weight + bias.
    L_out = (T + 2 * padding - K) // stride + 1
    wm_ref = np.asarray(weight * mask, np.float64)
    xp = np.pad(np.asarray(x, np.float64), ((0, 0), (0, 0), (padding, padding)))
    ref = np.zeros((B, C_out, L_out))
    for kk in range(K):
        xs = xp[:, :, kk: kk + stride * (L_out - 1) + 1: stride]
        ref += np.einsum("oi,bil->bol", wm_ref[:, :, kk], xs)
    ref += np.asarray(bias, np.float64)[None, :, None]

    assert out.shape == (B, C_out, L_out)
    # loose tolerance is intentional: MXU operands are bf16 (f32 accumulation)
    np.testing.assert_allclose(np.asarray(out, np.float64), ref,
                               rtol=2e-2, atol=2e-2)

    # -------- SkeletonLinear (dependent class; add_offset/offset_enc) ------
    lin_in_per = 3
    lin_in = lin_in_per * joint_num  # 12
    w_l, m_l, b_l = make_skeleton_linear_params(
        neighbour_list, lin_in, C_out, k_lin)
    x_l = jax.random.normal(k_xo, (B, joint_num, lin_in_per), dtype=jnp.float32)

    out_l = skeleton_linear(x_l, w_l, m_l, b_l, extra_dim1=True)
    out_l = jax.block_until_ready(out_l)

    ref_l = (np.asarray(x_l, np.float64).reshape(B, -1)
             @ np.asarray(w_l * m_l, np.float64).T
             + np.asarray(b_l, np.float64))[..., None]
    assert out_l.shape == (B, C_out, 1)
    np.testing.assert_allclose(np.asarray(out_l, np.float64), ref_l,
                               rtol=2e-2, atol=2e-2)

    print("KERNEL_OK")
</pallas_src>

<mosaic_0001>
module attributes {stable_mosaic.version = 11 : i64} {
  func.func @_skeleton_conv_kernel(%arg0: i32, %arg1: memref<48x128xbf16, #tpu.memory_space<vmem>>, %arg2: memref<32x48xbf16, #tpu.memory_space<vmem>>, %arg3: memref<32x1xf32, #tpu.memory_space<vmem>>, %arg4: memref<32x128xf32, #tpu.memory_space<vmem>>) attributes {dimension_semantics = [#tpu.dimension_semantics<parallel>], iteration_bounds = array<i64: 2>, scalar_prefetch = 0 : i64, scratch_operands = 0 : i64, tpu.core_type = #tpu.core_type<tc>, window_params = [{transform_indices = @transform_0, window_bounds = array<i64: 48, 128>}, {pipeline_mode = #tpu.pipeline_mode<synchronous>, transform_indices = @transform_1, window_bounds = array<i64: 32, 48>}, {pipeline_mode = #tpu.pipeline_mode<synchronous>, transform_indices = @transform_2, window_bounds = array<i64: 32, 1>}, {transform_indices = @transform_3, window_bounds = array<i64: 32, 128>}]} {
    %c0 = arith.constant 0 : index
    %c0_0 = arith.constant 0 : index
    %0 = vector.load %arg2[%c0, %c0_0] : memref<32x48xbf16, #tpu.memory_space<vmem>>, vector<32x48xbf16>
    %c0_1 = arith.constant 0 : index
    %c0_2 = arith.constant 0 : index
    %1 = vector.load %arg1[%c0_1, %c0_2] : memref<48x128xbf16, #tpu.memory_space<vmem>>, vector<48x128xbf16>
    %cst = arith.constant dense<0.000000e+00> : vector<32x128xf32>
    %2 = tpu.matmul %0, %1, %cst {dimension_numbers = #tpu.dot_dimension_numbers<[1], [0], [0], [1], [0, 0, 1, 1], [], []>} : vector<32x48xbf16>, vector<48x128xbf16>, vector<32x128xf32> -> vector<32x128xf32>
    %c0_3 = arith.constant 0 : index
    %c0_4 = arith.constant 0 : index
    %3 = vector.load %arg3[%c0_3, %c0_4] : memref<32x1xf32, #tpu.memory_space<vmem>>, vector<32x1xf32>
    %4 = vector.broadcast %3 : vector<32x1xf32> to vector<32x128xf32>
    %5 = arith.addf %2, %4 : vector<32x128xf32>
    %c0_5 = arith.constant 0 : index
    %c0_6 = arith.constant 0 : index
    %6 = vector.load %arg4[%c0_5, %c0_6] : memref<32x128xf32, #tpu.memory_space<vmem>>, vector<32x128xf32>
    tpu.vector_store %arg4[%c0_5, %c0_6], %5 {strides = array<i32>} : memref<32x128xf32, #tpu.memory_space<vmem>>, vector<32x128xf32>,
    return
  }
  func.func @transform_0(%arg0: i32) -> (i32, i32) {
    %c0_i32 = arith.constant 0 : i32
    %c0_i32_0 = arith.constant 0 : i32
    return %c0_i32, %arg0 : i32, i32
  }
  func.func @transform_1(%arg0: i32) -> (i32, i32) {
    %c0_i32 = arith.constant 0 : i32
    %c0_i32_0 = arith.constant 0 : i32
    %c0_i32_1 = arith.constant 0 : i32
    return %c0_i32, %c0_i32_0 : i32, i32
  }
  func.func @transform_2(%arg0: i32) -> (i32, i32) {
    %c0_i32 = arith.constant 0 : i32
    %c0_i32_0 = arith.constant 0 : i32
    %c0_i32_1 = arith.constant 0 : i32
    return %c0_i32, %c0_i32_0 : i32, i32
  }
  func.func @transform_3(%arg0: i32) -> (i32, i32) {
    %c0_i32 = arith.constant 0 : i32
    %c0_i32_0 = arith.constant 0 : i32
    return %c0_i32, %arg0 : i32, i32
  }
}

</mosaic_0001>

<bundles_post_ra>
// kernel: tpu_custom_call.1
= control target key start
LH: loop header
LB: loop body
LE: loop exit
PB: predicated region body
PF: predicated region fallthrough
CT: control target
= control target key end

     0   :  { %8 = vsyncpa [#allocation3], 0  ;;  %s797_s0 = inlined_call_operand.hbm [shape: bf16[48,256], index: 0, kind: input, shape index: {}]   ;;  %s798_s1 = inlined_call_operand.vmem [shape: bf16[32,48], index: 1, kind: input, shape index: {}]   ;;  %s799_s2 = inlined_call_operand.vmem [shape: f32[32,1], index: 2, kind: input, shape index: {}]   ;;  %s800_s3 = inlined_call_operand.hbm [shape: f32[32,256], index: 3, kind: output, shape index: {}]  }
   0x1   :  { %10 = vsyncpa [#allocation3 + $0x1], 0 }
   0x2   :  { %11 = vsyncpa [#allocation4], 0 }
   0x3   :  { %13 = vsyncpa [#allocation4 + $0x1], 0  ;;  %s618_s12 = smov 0   ;;  %s620_s13 = smov 0  }
   0x4   :  { %s622_s14 = smov 0   ;;  %s624_s15 = smov 0  }
   0x5 LB: > { %s639_s16 = sadd.s32 4294967295, %s587_s15   ;;  %s397_s17 = sadd.s32 4294967294, %s587_s15   ;;  %s587_s15 = sphi %s624_s15, %s813_s15   ;;  %s583_s14 = sphi %s622_s14, %s812_s14   ;;  %s579_s13 = sphi %s620_s13, %s811_s13   ;;  %s575_s12 = sphi %s618_s12, %s810_s12  }
   0x6   : > { %s643_s18 = sadd.s32 1, %s587_s15   ;;  %s26_s19 = sadd.s32 1, %s583_s14 }
   0x7   : > { %s23_s20 = ssub.s32 %s587_s15, %s643_s18  ;;  %p33_p0 = scmp.ne.s32.totalorder %s583_s14, %s579_s13 }
   0x8   : > { %p24_p1 = scmp.eq.s32.totalorder %s23_s20, 0  ;;  %p34_p2 = scmp.eq.s32.totalorder %s587_s15, 0 }
   0x9   : > { %p39_p3 = scmp.ne.s32.totalorder %s579_s13, %s575_s12  ;;  %p40_p4 = scmp.eq.s32.totalorder %s639_s16, 0 }
   0xa   : > { %s655_s21 = scalar_select %p24_p1, %s583_s14, %s26_s19  }
   0xb   : > { %p35_p5 = por %p34_p2, %p33_p0  ;;  %p657_p6 = por %p40_p4, %p39_p3 }
   0xc   : > { %p105_p7 = scmp.eq.s32.totalorder %s639_s16, 1  ;;  %p111_p8 = scmp.eq.s32.totalorder %s397_s17, 1 }
   0xd   : > { %p443_p10 = scmp.lt.s32.totalorder %s587_s15, 2  ;;  %s137_s25 = sand.u32 1, %s583_s14  }
   0xe   : > { %p664_p11 = por %p105_p7, %p33_p0  ;;  %p668_p12 = por %p111_p8, %p39_p3 }
   0xf   : > { %s400_s26 = sshll.u32 %s587_s15, 6  ;;  %s429_s27 = smul.u32 24, %s137_s25 }
  0x10   : > { %s803_s23 = scalar_select %p664_p11, 1, 0 }
  0x11   : > { %s804_s24 = scalar_select %p668_p12, 1, 0 }
  0x12   : > { %s677_s30 = scalar_lea.hbm %s797_s0, %s400_s26  ;;  %p679_p13 = pnand %p443_p10, %p35_p5 }
  0x13   : > { %s141_s5 = scalar_lea.vmem [#allocation2], %s429_s27  ;;  %s686_s7 = scalar_lea.sflag [#allocation3], %s137_s25 }
  0x14   : > { %s147_s6 = sshll.u32 %s141_s5, 4  ;;  %s491_s8 = scalar_lea.hbm %s677_s30, 384  ;;  %s683_s6 = int_to_ptr.vmem [resolvable:$true] %s147_s6 }
  0x15   : > { %p492_p1 = scmp.ne.s32.totalorder %s677_s30, %s491_s8  ;;  %p493_p2 = pneg %p679_p13 }
  0x16   : > { %s496_s11 = scalar_lea.hbm %s797_s0, 768  ;;  %p497_p5 = scmp.lt.u32.totalorder %s677_s30, %s797_s0 }
  0x17   : > { %p494_p3 = pnand %p493_p2, %p492_p1  ;;  %p498_p7 = scmp.lt.u32.totalorder %s496_s11, %s491_s8 }
  0x18   : > { %p500_p10 = scmp.lt.u32.totalorder %s491_s8, %s677_s30 }
  0x19   : > { %p495_p4 = pneg %p494_p3  ;;  %p499_p8 = por %p498_p7, %p497_p5 }
  0x1b   : > { %p501_p9 = por %p500_p10, %p499_p8 }
  0x1d   : > { %p502_p0 = pnand %p501_p9, %p495_p4 }
  0x1f   : > { %505 = shalt.err (!%p502_p0)
}
  0x20   : > { %s506_s20 = scalar_lea.vmem %s683_s6, 384  ;;  %s589_s25 = smov [#allocation2]  }
  0x21   : > { %p507_p1 = scmp.ne.s32.totalorder %s683_s6, %s506_s20  ;;  %s511_s26 = sshll.u32 %s589_s25, 4  ;;  %s512_s26 = int_to_ptr.vmem [resolvable:$false] %s511_s26 }
  0x22   : > { %s513_s27 = scalar_lea.vmem %s512_s26, 768  ;;  %p514_p11 = scmp.lt.s32.totalorder %s683_s6, %s512_s26 }
  0x23   : > { %p509_p3 = pnand %p507_p1, %p493_p2  ;;  %p515_p5 = scmp.lt.s32.totalorder %s513_s27, %s506_s20 }
  0x25   : > { %p510_p12 = pneg %p509_p3  ;;  %p516_p7 = por %p515_p5, %p514_p11 }
  0x27   : > { %p517_p8 = pnand %p516_p7, %p510_p12 }
  0x29   : > { %520 = shalt.err (!%p517_p8)
}
  0x2a   : > { %s590_s28 = smov 128   ;;  %s591_s29 = smov 64  }
  0x2b   : > { %s592_s5 = smov 4   ;;  %p155_p9 = scmp.lt.s32.totalorder %s587_s15, 3 }
  0x2c   : > { %438 = dma.hbm_to_vmem [thread:$0]  (!%p679_p13), %s677_s30, 384, %s683_s6, %s686_s7, %s590_s28, %s591_s29, %s592_s5  }
  0x2d   : > { %p806_p0 = scmp.ge.s32.totalorder %s587_s15, 1 }
  0x2f   : > { %p156_p2 = pnand %p806_p0, %p155_p9 }
  0x30   : > { %s718_s8 = sand.u32 (!%p156_p2), 1, %s579_s13  }
  0x31   : > { %159 = sbr.rel (%p156_p2) target bundleno = 304 (0x130), region = 32  ;;  %s162_s10 = scalar_lea.sflag (!%p156_p2), [#allocation3], %s718_s8 }
  0x32   : > { %s430_s9 = smul.u32 (!%p156_p2), 24, %s718_s8 }
  0x34   : > { %s165_s11 = scalar_lea.vmem (!%p156_p2), [#allocation2], %s430_s9 }
  0x38   : > { %566 = dma.done.wait (%p657_p6), %s162_s10, 384  }
  0x39   : > { %568 = vsyncadd (%p657_p6), %s162_s10, 4294966912  ;;  %v593_v0 = vmov 0   ;;  %v486_v1 = vld [vmem:[%s165_s11] sm:$0xff]   ;;  %v487_v2 = vld [vmem:[%s165_s11 + $0x8] sm:$0xff]   ;;  %vm251_vm0 = vcmask 392192   ;;  %s402_s29 = sshll.u32 %s718_s8, 5 }
  0x3a   : > { %485 = vset.pattern.permute.xlu1 %v593_v0  ;;  %484 = vset.pattern.permute.xlu0 %v593_v0  ;;  %v489_v3 = vld [vmem:[%s798_s1] sm:$0xff]   ;;  %v488_v4 = vld [vmem:[%s165_s11 + $0x10] sm:$0xff]   ;;  %v202_v7 = vld [vmem:[%s799_s2 + $0x18] sm:$0xff]  ;;  %s187_s5 = scalar_lea.vmem [#allocation5], %s402_s29  ;;  %s411_s10 = sshll.u32 %s639_s16, 7 }
  0x3b   : > { %419 = vmatprep.subr.bf16.mxu0 %v486_v1  ;;  %425 = vmatprep.mubr.msk.bf16.mxu0 %vm251_vm0, %v489_v3  ;;  %v201_v5 = vld [vmem:[%s799_s2 + $0x10] sm:$0xff]  ;;  %v199_v6 = vld [vmem:[%s799_s2] sm:$0xff]  ;;  %v200_v8 = vld [vmem:[%s799_s2 + $0x8] sm:$0xff]  ;;  %s324_s9 = sshll.u32 %s187_s5, 4  ;;  %s753_s16 = scalar_lea.hbm %s800_s3, %s411_s10  ;;  %s748_s9 = int_to_ptr.vmem [resolvable:$true] %s324_s9 }
  0x3c   : > { %420 = vmatpush3.bf16.msra.mxu0 %v486_v1  ;;  %215 = vperm.xlu1 %485, %v201_v5   ;;  %v490_v9 = vld [vmem:[%s798_s1 + $0x8] sm:$0xff]   ;;  %s312_s4 = scalar_lea.sflag [#allocation4], %s718_s8  ;;  %s521_s6 = scalar_lea.vmem %s748_s9, 512 }
  0x3d   : > { %421 = vmatprep.subr.bf16.mxu0 %v487_v2  ;;  %205 = vperm.xlu0 %484, %v199_v6   ;;  %p522_p6 = scmp.ne.s32.totalorder %s748_s9, %s521_s6  ;;  %p807_p11 = scmp.ne.s32.totalorder %s803_s23, 0 }
  0x3e   : > { %s594_s22 = smov [#allocation5]  }
  0x3f   : > { %p523_p12 = pnand %p522_p6, %p807_p11  ;;  %s525_s7 = sshll.u32 %s594_s22, 4  ;;  %s526_s7 = int_to_ptr.vmem [resolvable:$false] %s525_s7 }
  0x40   : > { %422 = vmatpush3.bf16.msra.mxu0 %v487_v2  ;;  %220 = vperm.xlu1 %485, %v202_v7   ;;  %s527_s17 = scalar_lea.vmem %s526_s7, 1024  ;;  %p528_p4 = scmp.lt.s32.totalorder %s748_s9, %s526_s7 }
  0x41   : > { %423 = vmatprep.subr.bf16.mxu0 %v488_v4  ;;  %210 = vperm.xlu0 %484, %v200_v8   ;;  %p524_p13 = pneg %p523_p12  ;;  %p529_p10 = scmp.lt.s32.totalorder %s527_s17, %s521_s6 }
  0x43   : > { %p530_p1 = por %p529_p10, %p528_p4 }
  0x44   : > { %424 = vmatpush3.bf16.msra.mxu0 %v488_v4 }
  0x45   : > { %p531_p3 = pnand %p530_p1, %p524_p13 }
  0x47   : > { %426 = vmatmul.mubr.msk.bf16.vlgmr.msra.gmra.mrb[0].mxu0 %vm251_vm0, %v490_v9 }
  0xbb   : > { %v216_v10 = vpop.permute.xlu1 %215 }
  0xbc   : > { %v206_v11 = vpop.permute.xlu0 %205 }
  0xbf   : > { %v221_v15 = vpop.permute.xlu1 %220 }
  0xc0   : > { %v211_v18 = vpop.permute.xlu0 %210 }
 0x11a   : > { %v427_v12 = vpop.f32.mrb[0].mxu0 }
 0x11b   : > { %v301_v13 = vadd.f32 %v427_v12, %v216_v10  ;;  %v292_v14 = vpop.f32.mrb[1].mxu0 }
 0x11c   : > { %v293_v16 = vadd.f32 %v292_v14, %v206_v11  ;;  %v428_v17 = vpop.f32.mrb[2].mxu0 }
 0x11d   : > { %309 = vst [vmem:[%s187_s5 + $0x10] sm:$0xff] %v301_v13  ;;  %v304_v19 = vadd.f32 %v428_v17, %v221_v15  ;;  %v295_v20 = vpop.f32.mrb[3].mxu0 }
 0x11e   : > { %307 = vst [vmem:[%s187_s5] sm:$0xff] %v293_v16  ;;  %v296_v21 = vadd.f32 %v295_v20, %v211_v18 }
 0x11f   : > { %310 = vst [vmem:[%s187_s5 + $0x18] sm:$0xff] %v304_v19 }
 0x120   : > { %308 = vst [vmem:[%s187_s5 + $0x8] sm:$0xff] %v296_v21 }
 0x121   : > { %534 = shalt.err (!%p531_p3)
}
 0x122   : > { %s535_s19 = scalar_lea.hbm %s753_s16, 512  ;;  %s539_s26 = scalar_lea.hbm %s800_s3, 1024 }
 0x123   : > { %p536_p5 = scmp.ne.s32.totalorder %s753_s16, %s535_s19  ;;  %p540_p9 = scmp.lt.u32.totalorder %s753_s16, %s800_s3 }
 0x124   : > { %p541_p0 = scmp.lt.u32.totalorder %s539_s26, %s535_s19  ;;  %p543_p6 = scmp.lt.u32.totalorder %s535_s19, %s753_s16 }
 0x125   : > { %p537_p7 = pnand %p536_p5, %p807_p11 }
 0x126   : > { %p542_p2 = por %p541_p0, %p540_p9 }
 0x127   : > { %p538_p8 = pneg %p537_p7 }
 0x128   : > { %p544_p12 = por %p543_p6, %p542_p2 }
 0x12a   : > { %p545_p13 = pnand %p544_p12, %p538_p8 }
 0x12c   : > { %548 = shalt.err (!%p545_p13)
}
 0x12d   : > { %s595_s29 = smov 128   ;;  %s596_s5 = smov 256  }
 0x12e   : > { %s597_s10 = smov 8  }
 0x12f   : > { %433 = dma.vmem_to_hbm [thread:$0]  (%p807_p11), %s748_s9, 512, %s753_s16, %s312_s4, %s595_s29, %s596_s5, %s597_s10  }
 0x130 PF: > { %s339_s11 = sand.u32 1, %s575_s12   ;;  %p808_p4 = scmp.ne.s32.totalorder %s804_s24, 0 }
 0x131   : > { %p809_p10 = scmp.ge.s32.totalorder %s587_s15, 2  ;;  %s340_s30 = scalar_lea.sflag [#allocation4], %s339_s11 }
 0x133   : > { %p440_p1 = pnand %p809_p10, %p808_p4 }
 0x135   : > { %570 = dma.done.wait (!%p440_p1), %s340_s30, 512  }
 0x136   : > { %572 = vsyncadd (!%p440_p1), %s340_s30, 4294966784  ;;  %p16_p3 = scmp.ge.s32.totalorder %s643_s18, 4   ;;  %s810_s12 = smov %s579_s13 }
 0x137   : > { %s811_s13 = smov %s583_s14  ;;  %s812_s14 = smov %s655_s21 }
 0x138   : > { %s813_s15 = smov %s643_s18  ;;  %18 = sbr.rel (!%p16_p3) target bundleno = 5 (0x5), region = 77 }
 0x13f   :  { %345 = vsyncpa [#allocation3], 1 }
 0x140   :  { %347 = vsyncpa [#allocation3 + $0x1], 1 }
 0x141   :  { %348 = vsyncpa [#allocation4], 1 }
 0x142   :  { %350 = vsyncpa [#allocation4 + $0x1], 1 }

</bundles_post_ra>
